<compile_context>
chip_gen: v7x
topology: tpu7x:2x2x1
jax: 0.10.0
libtpu: 0.0.40
codegen_flags: <defaults>
</compile_context>

<pallas_src>
import jax
import jax.numpy as jnp
from jax.experimental import pallas as pl
from jax.experimental.pallas import tpu as pltpu


HIDDEN = 512


def _fc1_relu_kernel(x_ref, w_ref, b_ref, o_ref):
    # x_ref: (TILE_N, L)  w_ref: (L, H)  b_ref: (1, H)  o_ref: (TILE_N, H)
    acc = jnp.dot(x_ref[...], w_ref[...], preferred_element_type=jnp.float32)
    acc = acc + b_ref[...]                      # bias broadcast over rows
    o_ref[...] = jnp.maximum(acc, 0.0).astype(o_ref.dtype)


def _pick_tile_n(n):
    # Full extent for small inputs (always a legal block); otherwise 1024 rows
    # (multiple of 8, near the HBM roofline, partial last block is handled by Pallas).
    return n if n <= 1024 else 1024


def mlp_forward(x, w1_t, b1, input_length):
    """Replicates MLP.forward: x.view(-1, input_length) -> relu(fc1(x))."""
    x2d = x.reshape(-1, input_length)           # glue: the .view() reshape
    n, l = x2d.shape
    h = w1_t.shape[1]
    b1_2d = b1.reshape(1, h)

    tile_n = _pick_tile_n(n)
    grid = (pl.cdiv(n, tile_n),)

    cost = pl.CostEstimate(
        flops=2 * n * l * h,
        transcendentals=0,
        bytes_accessed=4 * (n * l + l * h + h + n * h),
    )

    return pl.pallas_call(
        _fc1_relu_kernel,
        out_shape=jax.ShapeDtypeStruct((n, h), jnp.float32),
        grid_spec=pltpu.PrefetchScalarGridSpec(
            num_scalar_prefetch=0,
            grid=grid,
            in_specs=[
                # Row tile of activations: pipelined across the grid.
                pl.BlockSpec((tile_n, l), lambda i: (i, 0)),
                # Weight & bias: constant block index -> fetched once, VMEM-resident.
                pl.BlockSpec((l, h), lambda i: (0, 0)),
                pl.BlockSpec((1, h), lambda i: (0, 0)),
            ],
            out_specs=pl.BlockSpec((tile_n, h), lambda i: (i, 0)),
        ),
        compiler_params=pltpu.CompilerParams(
            # Row tiles are independent (no reduction axis).
            dimension_semantics=("parallel",)),
        cost_estimate=cost,
    )(x2d, w1_t, b1_2d)


if __name__ == "__main__":
    INPUT_LENGTH = 32

    key = jax.random.PRNGKey(0)
    kx, kw, kb = jax.random.split(key, 3)

    # Example input: (2, 4, 16, 16) -> view(-1, 32) gives 64 rows of length 32.
    x = jax.random.normal(kx, (2, 4, 16, 16), dtype=jnp.float32)

    # fc1 parameters. PyTorch stores weight as (512, input_length); we keep the
    # transposed (input_length, 512) layout for the kernel's x @ W matmul.
    bound = 1.0 / jnp.sqrt(INPUT_LENGTH)
    w1 = jax.random.uniform(kw, (HIDDEN, INPUT_LENGTH), jnp.float32, -bound, bound)
    b1 = jax.random.uniform(kb, (HIDDEN,), jnp.float32, -bound, bound)
    w1_t = jnp.transpose(w1)  # (INPUT_LENGTH, HIDDEN)

    out = mlp_forward(x, w1_t, b1, INPUT_LENGTH)
    out = jax.block_until_ready(out)

    # Sanity check vs plain JAX reference.
    ref = jnp.maximum(x.reshape(-1, INPUT_LENGTH) @ w1_t + b1, 0.0)
    assert out.shape == (x.size // INPUT_LENGTH, HIDDEN)
    assert jnp.allclose(out, ref, atol=1e-5, rtol=1e-5)

    # TODO(synk): fc2, fc3, and dropout are defined in __init__ but never used in
    # forward(), so they are intentionally not part of the kernel.
    print("KERNEL_OK")
</pallas_src>

<mosaic_0001>
module attributes {stable_mosaic.version = 11 : i64} {
  func.func @_fc1_relu_kernel(%arg0: i32, %arg1: memref<64x32xf32, #tpu.memory_space<vmem>>, %arg2: memref<32x512xf32, #tpu.memory_space<vmem>>, %arg3: memref<1x512xf32, #tpu.memory_space<vmem>>, %arg4: memref<64x512xf32, #tpu.memory_space<vmem>>) attributes {dimension_semantics = [#tpu.dimension_semantics<parallel>], iteration_bounds = array<i64: 1>, scalar_prefetch = 0 : i64, scratch_operands = 0 : i64, tpu.core_type = #tpu.core_type<tc>, window_params = [{transform_indices = @transform_0, window_bounds = array<i64: 64, 32>}, {pipeline_mode = #tpu.pipeline_mode<synchronous>, transform_indices = @transform_1, window_bounds = array<i64: 32, 512>}, {pipeline_mode = #tpu.pipeline_mode<synchronous>, transform_indices = @transform_2, window_bounds = array<i64: 1, 512>}, {transform_indices = @transform_3, window_bounds = array<i64: 64, 512>}]} {
    %c0 = arith.constant 0 : index
    %c0_0 = arith.constant 0 : index
    %0 = vector.load %arg1[%c0, %c0_0] : memref<64x32xf32, #tpu.memory_space<vmem>>, vector<64x32xf32>
    %c0_1 = arith.constant 0 : index
    %c0_2 = arith.constant 0 : index
    %1 = vector.load %arg2[%c0_1, %c0_2] : memref<32x512xf32, #tpu.memory_space<vmem>>, vector<32x512xf32>
    %cst = arith.constant dense<0.000000e+00> : vector<64x512xf32>
    %2 = tpu.matmul %0, %1, %cst {dimension_numbers = #tpu.dot_dimension_numbers<[1], [0], [0], [1], [0, 0, 1, 1], [], []>} : vector<64x32xf32>, vector<32x512xf32>, vector<64x512xf32> -> vector<64x512xf32>
    %c0_3 = arith.constant 0 : index
    %c0_4 = arith.constant 0 : index
    %3 = vector.load %arg3[%c0_3, %c0_4] : memref<1x512xf32, #tpu.memory_space<vmem>>, vector<1x512xf32>
    %4 = vector.broadcast %3 : vector<1x512xf32> to vector<64x512xf32>
    %5 = arith.addf %2, %4 : vector<64x512xf32>
    %cst_5 = arith.constant 0.000000e+00 : f32
    %6 = vector.broadcast %cst_5 : f32 to vector<64x512xf32>
    %7 = arith.maximumf %5, %6 : vector<64x512xf32>
    %c0_6 = arith.constant 0 : index
    %c0_7 = arith.constant 0 : index
    %8 = vector.load %arg4[%c0_6, %c0_7] : memref<64x512xf32, #tpu.memory_space<vmem>>, vector<64x512xf32>
    tpu.vector_store %arg4[%c0_6, %c0_7], %7 {strides = array<i32>} : memref<64x512xf32, #tpu.memory_space<vmem>>, vector<64x512xf32>,
    return
  }
  func.func @transform_0(%arg0: i32) -> (i32, i32) {
    %c0_i32 = arith.constant 0 : i32
    %c0_i32_0 = arith.constant 0 : i32
    return %arg0, %c0_i32 : i32, i32
  }
  func.func @transform_1(%arg0: i32) -> (i32, i32) {
    %c0_i32 = arith.constant 0 : i32
    %c0_i32_0 = arith.constant 0 : i32
    %c0_i32_1 = arith.constant 0 : i32
    return %c0_i32, %c0_i32_0 : i32, i32
  }
  func.func @transform_2(%arg0: i32) -> (i32, i32) {
    %c0_i32 = arith.constant 0 : i32
    %c0_i32_0 = arith.constant 0 : i32
    %c0_i32_1 = arith.constant 0 : i32
    return %c0_i32, %c0_i32_0 : i32, i32
  }
  func.func @transform_3(%arg0: i32) -> (i32, i32) {
    %c0_i32 = arith.constant 0 : i32
    %c0_i32_0 = arith.constant 0 : i32
    return %arg0, %c0_i32 : i32, i32
  }
}

</mosaic_0001>

<bundles_post_ra>
// kernel: tpu_custom_call.1
= control target key start
LH: loop header
LB: loop body
LE: loop exit
PB: predicated region body
PF: predicated region fallthrough
CT: control target
= control target key end

     0   :  { %8 = vsyncpa [#allocation3], 0  ;;  %s646_s0 = inlined_call_operand.vmem [shape: f32[64,32], index: 0, kind: input, shape index: {}]   ;;  %s647_s1 = inlined_call_operand.hbm [shape: f32[32,512], index: 1, kind: input, shape index: {}]   ;;  %s648_s2 = inlined_call_operand.vmem [shape: f32[1,512], index: 2, kind: input, shape index: {}]   ;;  %s649_s3 = inlined_call_operand.hbm [shape: f32[64,512], index: 3, kind: output, shape index: {}]  }
   0x1   :  { %9 = vsyncpa [#allocation4], 0  ;;  %s492_s12 = smov [#allocation2]   ;;  %s444_s16 = scalar_lea.hbm %s647_s1, 2048 }
   0x2   :  { %s17_s13 = sshll.u32 %s492_s12, 4  ;;  %p445_p0 = scmp.ne.s32.totalorder %s647_s1, %s444_s16  ;;  %s18_s13 = int_to_ptr.vmem [resolvable:$true] %s17_s13 }
   0x3   :  { %p448_p1 = scmp.lt.u32.totalorder %s444_s16, %s647_s1 }
   0x5   :  { %p450_p2 = pnand %p448_p1, %p445_p0 }
   0x7   :  { %453 = shalt.err (!%p450_p2)
}
   0x8   :  { %s454_s21 = scalar_lea.vmem %s18_s13, 2048  ;;  %p459_p4 = scmp.lt.s32.totalorder %s18_s13, %s18_s13 }
   0x9   :  { %p455_p3 = scmp.ne.s32.totalorder %s18_s13, %s454_s21  ;;  %p460_p5 = scmp.lt.s32.totalorder %s454_s21, %s454_s21 }
   0xb   :  { %p461_p6 = por %p460_p5, %p459_p4 }
   0xd   :  { %p462_p7 = pnand %p461_p6, %p455_p3 }
   0xf   :  { %465 = shalt.err (!%p462_p7)
}
  0x10   :  { %s493_s22 = smov 512   ;;  %s494_s23 = smov 32  }
  0x11   :  { %23 = dma.hbm_to_vmem [thread:$0]  %s647_s1, 2048, %s18_s13, [#allocation3], %s493_s22, %s493_s22, %s494_s23  }
  0x12   :  { %488 = dma.done.wait [#allocation3], 2048  }
  0x13   :  { %489 = vsyncadd [#allocation3], 4294965248  ;;  %v495_v0 = vmov 0.0   ;;  %v38_v1 = vld [vmem:[#allocation2 + $0x8] sm:$0xff]  ;;  %v40_v3 = vld [vmem:[#allocation2 + $0x18] sm:$0xff]  ;;  %vm75_vm0 = vcmask 261120   ;;  %v55_v33 = vlaneseq }
  0x14   :  { %164 = vmatprep.mubr.f32.mxu0 %v495_v0  ;;  %277 = vmatprep.mubr.f32.mxu1 %v495_v0  ;;  %v42_v2 = vld [vmem:[#allocation2 + $0x28] sm:$0xff]  ;;  %v44_v5 = vld [vmem:[#allocation2 + $0x38] sm:$0xff]  ;;  %v37_v6 = vld [vmem:[#allocation2] sm:$0xff] }
  0x15   :  { %v423_v4 = vpack.c.bf16 %v42_v2, %v38_v1  ;;  %v41_v7 = vld [vmem:[#allocation2 + $0x20] sm:$0xff]  ;;  %v431_v8 = vpack.c.bf16 %v44_v5, %v40_v3  ;;  %v39_v10 = vld [vmem:[#allocation2 + $0x10] sm:$0xff]  ;;  %v46_v12 = vld [vmem:[#allocation2 + $0x48] sm:$0xff]  ;;  %v56_v34 = vshrl.u32 %v55_v33, 7 }
  0x16   :  { %v425_v9 = vpack.c.bf16 %v41_v7, %v37_v6  ;;  %v43_v11 = vld [vmem:[#allocation2 + $0x30] sm:$0xff]  ;;  %v50_v14 = vld [vmem:[#allocation2 + $0x68] sm:$0xff]  ;;  %v48_v15 = vld [vmem:[#allocation2 + $0x58] sm:$0xff] }
  0x17   :  { %424 = vmatprep.subr.bf16.mxu0 %v423_v4  ;;  %v433_v13 = vpack.c.bf16 %v43_v11, %v39_v10  ;;  %v52_v16 = vld [vmem:[#allocation2 + $0x78] sm:$0xff]  ;;  %432 = vmatprep.subr.bf16.mxu1 %v431_v8  ;;  %v427_v17 = vpack.c.bf16 %v50_v14, %v46_v12  ;;  %v45_v19 = vld [vmem:[#allocation2 + $0x40] sm:$0xff]  ;;  %v47_v21 = vld [vmem:[#allocation2 + $0x50] sm:$0xff]  ;;  %v57_v35 = vsub.s32 0, %v56_v34  ;;  %v65_v37 = vsub.s32 2, %v56_v34 }
  0x18   :  { %426 = vmatpush1.bf16.msra.mxu0 %v425_v9  ;;  %v435_v18 = vpack.c.bf16 %v52_v16, %v48_v15  ;;  %v49_v20 = vld [vmem:[#allocation2 + $0x60] sm:$0xff]  ;;  %v51_v23 = vld [vmem:[#allocation2 + $0x70] sm:$0xff]  ;;  %v30_v26 = vld [vmem:[%s646_s0 + $0x8] sm:$0xff]  ;;  %v61_v38 = vsub.s32 1, %v56_v34  ;;  %v69_v39 = vsub.s32 3, %v56_v34 }
  0x19   :  { %434 = vmatpush1.bf16.msra.mxu1 %v433_v13  ;;  %v429_v22 = vpack.c.bf16 %v49_v20, %v45_v19  ;;  %428 = vmatprep.subr.bf16.mxu0 %v427_v17  ;;  %v437_v24 = vpack.c.bf16 %v51_v23, %v47_v21  ;;  %v29_v25 = vld [vmem:[%s646_s0] sm:$0xff]  ;;  %v31_v27 = vld [vmem:[%s646_s0 + $0x10] sm:$0xff]  ;;  %v32_v28 = vld [vmem:[%s646_s0 + $0x18] sm:$0xff] }
  0x1a   :  { %436 = vmatprep.subr.bf16.mxu1 %v435_v18  ;;  %v33_v29 = vld [vmem:[%s646_s0 + $0x20] sm:$0xff]  ;;  %v34_v30 = vld [vmem:[%s646_s0 + $0x28] sm:$0xff]  ;;  %v35_v31 = vld [vmem:[%s646_s0 + $0x30] sm:$0xff] }
  0x1b   :  { %v36_v32 = vld [vmem:[%s646_s0 + $0x38] sm:$0xff]  ;;  %v53_v36 = vld [vmem:[%s648_s2] sm:$0xf]  ;;  %s496_s0 = smov [#allocation5]  }
  0x1c   :  { %430 = vmatpush1.bf16.msra.mxu0 %v429_v22  ;;  %v591_v40 = vrot.slane %v53_v36, %v57_v35  ;;  %v593_v41 = vrot.slane %v53_v36, %v65_v37  ;;  %v595_v42 = vrot.slane %v53_v36, %v61_v38  ;;  %v597_v43 = vrot.slane %v53_v36, %v69_v39  ;;  %s395_s2 = sshll.u32 %s496_s0, 4  ;;  %s396_s2 = int_to_ptr.vmem [resolvable:$true] %s395_s2 }
  0x1d   :  { %438 = vmatpush1.bf16.msra.mxu1 %v437_v24  ;;  %s466_s16 = scalar_lea.vmem %s396_s2, 4096  ;;  %p471_p9 = scmp.lt.s32.totalorder %s396_s2, %s396_s2 }
  0x1e   :  { %p467_p8 = scmp.ne.s32.totalorder %s396_s2, %s466_s16  ;;  %p472_p10 = scmp.lt.s32.totalorder %s466_s16, %s466_s16 }
  0x1f   :  { %407 = vmatmul.mubr.msk.f32.vlgmr.msra.gmra.mrb[0].mxu0 %vm75_vm0, %v29_v25 }
  0x20   :  { %415 = vmatmul.mubr.msk.f32.vlgmr.msra.gmra.mrb[0].mxu1 %vm75_vm0, %v29_v25  ;;  %170 = vmatprep.mubr.f32.mxu0 %v495_v0  ;;  %p473_p11 = por %p472_p10, %p471_p9 }
  0x21   :  { %283 = vmatprep.mubr.f32.mxu1 %v495_v0 }
  0x22   :  { %p474_p12 = pnand %p473_p11, %p467_p8 }
  0x23   :  { %408 = vmatmul.mubr.msk.f32.gmra.mrb[2].mxu0 %vm75_vm0, %v30_v26 }
  0x24   :  { %416 = vmatmul.mubr.msk.f32.gmra.mrb[2].mxu1 %vm75_vm0, %v30_v26  ;;  %176 = vmatprep.mubr.f32.mxu0 %v495_v0 }
  0x25   :  { %289 = vmatprep.mubr.f32.mxu1 %v495_v0 }
  0x27   :  { %409 = vmatmul.mubr.msk.f32.gmra.mrb[4].mxu0 %vm75_vm0, %v31_v27 }
  0x28   :  { %417 = vmatmul.mubr.msk.f32.gmra.mrb[4].mxu1 %vm75_vm0, %v31_v27  ;;  %182 = vmatprep.mubr.f32.mxu0 %v495_v0 }
  0x29   :  { %295 = vmatprep.mubr.f32.mxu1 %v495_v0 }
  0x2b   :  { %410 = vmatmul.mubr.msk.f32.gmra.mrb[6].mxu0 %vm75_vm0, %v32_v28 }
  0x2c   :  { %418 = vmatmul.mubr.msk.f32.gmra.mrb[6].mxu1 %vm75_vm0, %v32_v28  ;;  %188 = vmatprep.mubr.f32.mxu0 %v495_v0 }
  0x2d   :  { %301 = vmatprep.mubr.f32.mxu1 %v495_v0 }
  0x2f   :  { %411 = vmatmul.mubr.msk.f32.gmra.mrb[8].mxu0 %vm75_vm0, %v33_v29 }
  0x30   :  { %419 = vmatmul.mubr.msk.f32.gmra.mrb[8].mxu1 %vm75_vm0, %v33_v29  ;;  %194 = vmatprep.mubr.f32.mxu0 %v495_v0 }
  0x31   :  { %307 = vmatprep.mubr.f32.mxu1 %v495_v0 }
  0x33   :  { %412 = vmatmul.mubr.msk.f32.gmra.mrb[10].mxu0 %vm75_vm0, %v34_v30 }
  0x34   :  { %420 = vmatmul.mubr.msk.f32.gmra.mrb[10].mxu1 %vm75_vm0, %v34_v30  ;;  %200 = vmatprep.mubr.f32.mxu0 %v495_v0 }
  0x35   :  { %313 = vmatprep.mubr.f32.mxu1 %v495_v0 }
  0x37   :  { %413 = vmatmul.mubr.msk.f32.gmra.mrb[12].mxu0 %vm75_vm0, %v35_v31 }
  0x38   :  { %421 = vmatmul.mubr.msk.f32.gmra.mrb[12].mxu1 %vm75_vm0, %v35_v31  ;;  %206 = vmatprep.mubr.f32.mxu0 %v495_v0 }
  0x39   :  { %319 = vmatprep.mubr.f32.mxu1 %v495_v0 }
  0x3b   :  { %414 = vmatmul.mubr.msk.f32.gmra.mrb[14].mxu0 %vm75_vm0, %v36_v32 }
  0x3c   :  { %422 = vmatmul.mubr.msk.f32.gmra.mrb[14].mxu1 %vm75_vm0, %v36_v32 }
  0xf2   :  { %v166_v44 = vpop.f32.mrb[0].mxu0 }
  0xf3   :  { %v167_v45 = vadd.f32 %v166_v44, %v591_v40  ;;  %v279_v46 = vpop.f32.mrb[0].mxu1  ;;  %v168_v47 = vpop.f32.mrb[1].mxu0 }
  0xf4   :  { %v280_v48 = vadd.f32 %v279_v46, %v593_v41  ;;  %v169_v49 = vadd.f32 %v168_v47, %v595_v42  ;;  %v281_v50 = vpop.f32.mrb[1].mxu1 }
  0xf5   :  { %v326_v51 = vmax.f32 %v167_v45, 0.0  ;;  %v282_v52 = vadd.f32 %v281_v50, %v597_v43 }
  0xf6   :  { %v328_v53 = vmax.f32 %v280_v48, 0.0  ;;  %v327_v54 = vmax.f32 %v169_v49, 0.0  ;;  %v172_v55 = vpop.f32.mrb[2].mxu0 }
  0xf7   :  { %358 = vst [vmem:[#allocation5] sm:$0xff] %v326_v51  ;;  %v329_v56 = vmax.f32 %v282_v52, 0.0  ;;  %v173_v57 = vadd.f32 %v172_v55, %v591_v40  ;;  %v285_v58 = vpop.f32.mrb[2].mxu1  ;;  %v174_v59 = vpop.f32.mrb[3].mxu0 }
  0xf8   :  { %360 = vst [vmem:[#allocation5 + $0x10] sm:$0xff] %v328_v53  ;;  %359 = vst [vmem:[#allocation5 + $0x8] sm:$0xff] %v327_v54  ;;  %v286_v60 = vadd.f32 %v285_v58, %v593_v41  ;;  %v175_v61 = vadd.f32 %v174_v59, %v595_v42  ;;  %v287_v62 = vpop.f32.mrb[3].mxu1 }
  0xf9   :  { %361 = vst [vmem:[#allocation5 + $0x18] sm:$0xff] %v329_v56  ;;  %v330_v63 = vmax.f32 %v173_v57, 0.0  ;;  %v288_v0 = vadd.f32 %v287_v62, %v597_v43 }
  0xfa   :  { %v332_v1 = vmax.f32 %v286_v60, 0.0  ;;  %v331_v2 = vmax.f32 %v175_v61, 0.0  ;;  %v178_v3 = vpop.f32.mrb[4].mxu0 }
  0xfb   :  { %362 = vst [vmem:[#allocation5 + $0x20] sm:$0xff] %v330_v63  ;;  %v333_v4 = vmax.f32 %v288_v0, 0.0  ;;  %v179_v5 = vadd.f32 %v178_v3, %v591_v40  ;;  %v291_v6 = vpop.f32.mrb[4].mxu1  ;;  %v180_v7 = vpop.f32.mrb[5].mxu0 }
  0xfc   :  { %364 = vst [vmem:[#allocation5 + $0x30] sm:$0xff] %v332_v1  ;;  %363 = vst [vmem:[#allocation5 + $0x28] sm:$0xff] %v331_v2  ;;  %v292_v8 = vadd.f32 %v291_v6, %v593_v41  ;;  %v181_v9 = vadd.f32 %v180_v7, %v595_v42  ;;  %v293_v10 = vpop.f32.mrb[5].mxu1 }
  0xfd   :  { %365 = vst [vmem:[#allocation5 + $0x38] sm:$0xff] %v333_v4  ;;  %v334_v11 = vmax.f32 %v179_v5, 0.0  ;;  %v294_v12 = vadd.f32 %v293_v10, %v597_v43 }
  0xfe   :  { %v336_v13 = vmax.f32 %v292_v8, 0.0  ;;  %v335_v14 = vmax.f32 %v181_v9, 0.0  ;;  %v184_v15 = vpop.f32.mrb[6].mxu0 }
  0xff   :  { %366 = vst [vmem:[#allocation5 + $0x40] sm:$0xff] %v334_v11  ;;  %v337_v16 = vmax.f32 %v294_v12, 0.0  ;;  %v185_v17 = vadd.f32 %v184_v15, %v591_v40  ;;  %v297_v18 = vpop.f32.mrb[6].mxu1  ;;  %v186_v19 = vpop.f32.mrb[7].mxu0 }
 0x100   :  { %368 = vst [vmem:[#allocation5 + $0x50] sm:$0xff] %v336_v13  ;;  %367 = vst [vmem:[#allocation5 + $0x48] sm:$0xff] %v335_v14  ;;  %v298_v20 = vadd.f32 %v297_v18, %v593_v41  ;;  %v187_v21 = vadd.f32 %v186_v19, %v595_v42  ;;  %v299_v22 = vpop.f32.mrb[7].mxu1 }
 0x101   :  { %369 = vst [vmem:[#allocation5 + $0x58] sm:$0xff] %v337_v16  ;;  %v338_v23 = vmax.f32 %v185_v17, 0.0  ;;  %v300_v24 = vadd.f32 %v299_v22, %v597_v43 }
 0x102   :  { %v340_v25 = vmax.f32 %v298_v20, 0.0  ;;  %v339_v26 = vmax.f32 %v187_v21, 0.0  ;;  %v190_v27 = vpop.f32.mrb[8].mxu0 }
 0x103   :  { %370 = vst [vmem:[#allocation5 + $0x60] sm:$0xff] %v338_v23  ;;  %v341_v28 = vmax.f32 %v300_v24, 0.0  ;;  %v191_v29 = vadd.f32 %v190_v27, %v591_v40  ;;  %v303_v30 = vpop.f32.mrb[8].mxu1  ;;  %v192_v31 = vpop.f32.mrb[9].mxu0 }
 0x104   :  { %372 = vst [vmem:[#allocation5 + $0x70] sm:$0xff] %v340_v25  ;;  %371 = vst [vmem:[#allocation5 + $0x68] sm:$0xff] %v339_v26  ;;  %v304_v32 = vadd.f32 %v303_v30, %v593_v41  ;;  %v193_v33 = vadd.f32 %v192_v31, %v595_v42  ;;  %v305_v34 = vpop.f32.mrb[9].mxu1 }
 0x105   :  { %373 = vst [vmem:[#allocation5 + $0x78] sm:$0xff] %v341_v28  ;;  %v342_v35 = vmax.f32 %v191_v29, 0.0  ;;  %v306_v36 = vadd.f32 %v305_v34, %v597_v43 }
 0x106   :  { %v344_v37 = vmax.f32 %v304_v32, 0.0  ;;  %v343_v38 = vmax.f32 %v193_v33, 0.0  ;;  %v196_v39 = vpop.f32.mrb[10].mxu0 }
 0x107   :  { %374 = vst [vmem:[#allocation5 + $0x80] sm:$0xff] %v342_v35  ;;  %v345_v44 = vmax.f32 %v306_v36, 0.0  ;;  %v197_v45 = vadd.f32 %v196_v39, %v591_v40  ;;  %v309_v46 = vpop.f32.mrb[10].mxu1  ;;  %v198_v47 = vpop.f32.mrb[11].mxu0 }
 0x108   :  { %376 = vst [vmem:[#allocation5 + $0x90] sm:$0xff] %v344_v37  ;;  %375 = vst [vmem:[#allocation5 + $0x88] sm:$0xff] %v343_v38  ;;  %v310_v48 = vadd.f32 %v309_v46, %v593_v41  ;;  %v199_v49 = vadd.f32 %v198_v47, %v595_v42  ;;  %v311_v50 = vpop.f32.mrb[11].mxu1 }
 0x109   :  { %377 = vst [vmem:[#allocation5 + $0x98] sm:$0xff] %v345_v44  ;;  %v346_v51 = vmax.f32 %v197_v45, 0.0  ;;  %v312_v52 = vadd.f32 %v311_v50, %v597_v43 }
 0x10a   :  { %v348_v53 = vmax.f32 %v310_v48, 0.0  ;;  %v347_v54 = vmax.f32 %v199_v49, 0.0  ;;  %v202_v55 = vpop.f32.mrb[12].mxu0 }
 0x10b   :  { %378 = vst [vmem:[#allocation5 + $0xa0] sm:$0xff] %v346_v51  ;;  %v349_v56 = vmax.f32 %v312_v52, 0.0  ;;  %v203_v57 = vadd.f32 %v202_v55, %v591_v40  ;;  %v315_v58 = vpop.f32.mrb[12].mxu1  ;;  %v204_v59 = vpop.f32.mrb[13].mxu0 }
 0x10c   :  { %380 = vst [vmem:[#allocation5 + $0xb0] sm:$0xff] %v348_v53  ;;  %379 = vst [vmem:[#allocation5 + $0xa8] sm:$0xff] %v347_v54  ;;  %v316_v60 = vadd.f32 %v315_v58, %v593_v41  ;;  %v205_v61 = vadd.f32 %v204_v59, %v595_v42  ;;  %v317_v62 = vpop.f32.mrb[13].mxu1 }
 0x10d   :  { %381 = vst [vmem:[#allocation5 + $0xb8] sm:$0xff] %v349_v56  ;;  %v350_v63 = vmax.f32 %v203_v57, 0.0  ;;  %v318_v0 = vadd.f32 %v317_v62, %v597_v43 }
 0x10e   :  { %v352_v1 = vmax.f32 %v316_v60, 0.0  ;;  %v351_v2 = vmax.f32 %v205_v61, 0.0  ;;  %v208_v3 = vpop.f32.mrb[14].mxu0 }
 0x10f   :  { %382 = vst [vmem:[#allocation5 + $0xc0] sm:$0xff] %v350_v63  ;;  %v353_v4 = vmax.f32 %v318_v0, 0.0  ;;  %v209_v5 = vadd.f32 %v208_v3, %v591_v40  ;;  %v321_v6 = vpop.f32.mrb[14].mxu1  ;;  %v210_v7 = vpop.f32.mrb[15].mxu0 }
 0x110   :  { %384 = vst [vmem:[#allocation5 + $0xd0] sm:$0xff] %v352_v1  ;;  %383 = vst [vmem:[#allocation5 + $0xc8] sm:$0xff] %v351_v2  ;;  %v322_v8 = vadd.f32 %v321_v6, %v593_v41  ;;  %v211_v9 = vadd.f32 %v210_v7, %v595_v42  ;;  %v323_v10 = vpop.f32.mrb[15].mxu1 }
 0x111   :  { %385 = vst [vmem:[#allocation5 + $0xd8] sm:$0xff] %v353_v4  ;;  %v354_v11 = vmax.f32 %v209_v5, 0.0  ;;  %v324_v12 = vadd.f32 %v323_v10, %v597_v43 }
 0x112   :  { %v356_v13 = vmax.f32 %v322_v8, 0.0  ;;  %v355_v14 = vmax.f32 %v211_v9, 0.0 }
 0x113   :  { %386 = vst [vmem:[#allocation5 + $0xe0] sm:$0xff] %v354_v11  ;;  %v357_v15 = vmax.f32 %v324_v12, 0.0 }
 0x114   :  { %388 = vst [vmem:[#allocation5 + $0xf0] sm:$0xff] %v356_v13  ;;  %387 = vst [vmem:[#allocation5 + $0xe8] sm:$0xff] %v355_v14 }
 0x115   :  { %389 = vst [vmem:[#allocation5 + $0xf8] sm:$0xff] %v357_v15 }
 0x116   :  { %477 = shalt.err (!%p474_p12)
}
 0x117   :  { %s478_s19 = scalar_lea.hbm %s649_s3, 4096 }
 0x118   :  { %p479_p13 = scmp.ne.s32.totalorder %s649_s3, %s478_s19  ;;  %p482_p0 = scmp.lt.u32.totalorder %s478_s19, %s649_s3 }
 0x11a   :  { %p484_p1 = pnand %p482_p0, %p479_p13 }
 0x11c   :  { %487 = shalt.err (!%p484_p1)
}
 0x11d   :  { %401 = dma.vmem_to_hbm [thread:$0]  %s396_s2, 4096, %s649_s3, [#allocation4], %s493_s22, %s493_s22, %s494_s23  }
 0x11e   :  { %490 = dma.done.wait [#allocation4], 4096  }
 0x11f   :  { %491 = vsyncadd [#allocation4], 4294963200 }
 0x120   :  { %405 = vsyncpa [#allocation3], 1 }
 0x121   :  { %406 = vsyncpa [#allocation4], 1 }

</bundles_post_ra>
